<compile_context>
chip_gen: v7x
topology: tpu7x:2x2x1
jax: 0.10.0
libtpu: 0.0.40
codegen_flags: <defaults>
</compile_context>

<pallas_src>
import jax
import jax.numpy as jnp
from jax.experimental import pallas as pl
from jax.experimental.pallas import tpu as pltpu

_LANES = 128          # vreg lane width (last dim must be a multiple of 128)
_SUBLANES = 8         # f32 sublane height (second-to-last dim multiple of 8)
_MAX_TILE_ROWS = 512  # 512 x 128 f32 = 256 KiB per block (~85% HBM roofline)


def _affine_relu_kernel(w_ref, b_ref, x_ref, o_ref):
    # fc1 with in_features == out_features == 1 degenerates to a per-element
    # affine transform. Scalars come from SMEM (scalar path), data is a
    # lane-dense (TILE, 128) slab -> pure VPU work, nothing hits the MXU.
    w = w_ref[0, 0]
    b = b_ref[0]
    o_ref[...] = jnp.maximum(x_ref[...] * w + b, 0.0)


def net_forward(x, weight, bias, *, max_tile_rows=_MAX_TILE_ROWS):
    """Computes relu(fc1(x)) with a Pallas kernel.

    x:      (N, 1) float32
    weight: (1, 1) float32  (PyTorch Linear weight, shape (out, in))
    bias:   (1,)   float32
    returns (N, 1) float32
    """
    n, f = x.shape
    assert f == 1, "fc1 expects in_features == 1"
    dtype = x.dtype

    # ---- lane-dense repack: (N, 1) -> (rows, 128) slab -------------------
    rows = pl.cdiv(n, _LANES)
    rows = ((rows + _SUBLANES - 1) // _SUBLANES) * _SUBLANES      # sublane align
    tile_rows = min(max_tile_rows, rows)
    rows = ((rows + tile_rows - 1) // tile_rows) * tile_rows      # grid covers exactly
    padded = rows * _LANES

    x_slab = jnp.pad(x.reshape(-1), (0, padded - n)).reshape(rows, _LANES)

    grid = (rows // tile_rows,)
    out_slab = pl.pallas_call(
        _affine_relu_kernel,
        out_shape=jax.ShapeDtypeStruct((rows, _LANES), dtype),
        grid_spec=pl.GridSpec(
            grid=grid,
            in_specs=[
                # scalar params live in SMEM (no padded VMEM tiles / DMAs)
                pl.BlockSpec(memory_space=pltpu.MemorySpace.SMEM),   # weight (1,1)
                pl.BlockSpec(memory_space=pltpu.MemorySpace.SMEM),   # bias   (1,)
                # lane-dense data tile, auto double-buffered by BlockSpec
                pl.BlockSpec((tile_rows, _LANES), lambda i: (i, 0)),
            ],
            out_specs=pl.BlockSpec((tile_rows, _LANES), lambda i: (i, 0)),
        ),
        compiler_params=pltpu.CompilerParams(
            dimension_semantics=("parallel",),   # shard grid across TCs on v7x
            vmem_limit_bytes=16 * 1024 * 1024,   # >> 2 bufs * 2 arrays * 256 KiB
        ),
    )(weight, bias, x_slab)

    # ---- unpack back to (N, 1), dropping padding --------------------------
    return out_slab.reshape(-1)[:n].reshape(n, 1)


if __name__ == "__main__":
    key = jax.random.PRNGKey(0)
    kx, kw, kb = jax.random.split(key, 3)

    # Small shapes consistent with the module: batch of 8 samples, 1 feature.
    x = jax.random.normal(kx, (8, 1), dtype=jnp.float32)
    weight = jax.random.normal(kw, (1, 1), dtype=jnp.float32)
    bias = jax.random.normal(kb, (1,), dtype=jnp.float32)

    out = net_forward(x, weight, bias)
    jax.block_until_ready(out)

    ref = jnp.maximum(x @ weight.T + bias, 0.0)
    assert out.shape == ref.shape
    assert jnp.allclose(out, ref, atol=1e-6), "mismatch vs reference"

    # Secondary check: exercise padding + multi-tile grid path at small size.
    x2 = jax.random.normal(kx, (300, 1), dtype=jnp.float32)
    out2 = net_forward(x2, weight, bias, max_tile_rows=8)   # forces grid > 1
    jax.block_until_ready(out2)
    ref2 = jnp.maximum(x2 @ weight.T + bias, 0.0)
    assert jnp.allclose(out2, ref2, atol=1e-6), "mismatch vs reference (tiled)"

    # NOTE: the original PyTorch forward() returns None (no return statement);
    # the computed `out` above reproduces the internal computation.
    print("KERNEL_OK")
</pallas_src>

<mosaic_0001>
module attributes {stable_mosaic.version = 11 : i64} {
  func.func @_affine_relu_kernel(%arg0: i32, %arg1: memref<1x1xf32, #tpu.memory_space<smem>>, %arg2: memref<1xf32, #tpu.memory_space<smem>>, %arg3: memref<8x128xf32, #tpu.memory_space<vmem>>, %arg4: memref<8x128xf32, #tpu.memory_space<vmem>>) attributes {dimension_semantics = [#tpu.dimension_semantics<parallel>], iteration_bounds = array<i64: 1>, scalar_prefetch = 0 : i64, scratch_operands = 0 : i64, tpu.core_type = #tpu.core_type<tc>, window_params = [{transform_indices = @transform_0, window_bounds = array<i64: 1, 1>}, {transform_indices = @transform_1, window_bounds = array<i64: 1>}, {transform_indices = @transform_2, window_bounds = array<i64: 8, 128>}, {transform_indices = @transform_3, window_bounds = array<i64: 8, 128>}]} {
    %c0 = arith.constant 0 : index
    %c0_0 = arith.constant 0 : index
    %0 = memref.load %arg1[%c0, %c0_0] : memref<1x1xf32, #tpu.memory_space<smem>>
    %c0_1 = arith.constant 0 : index
    %1 = memref.load %arg2[%c0_1] : memref<1xf32, #tpu.memory_space<smem>>
    %c0_2 = arith.constant 0 : index
    %c0_3 = arith.constant 0 : index
    %2 = vector.load %arg3[%c0_2, %c0_3] : memref<8x128xf32, #tpu.memory_space<vmem>>, vector<8x128xf32>
    %3 = vector.broadcast %0 : f32 to vector<8x128xf32>
    %4 = arith.mulf %2, %3 : vector<8x128xf32>
    %5 = vector.broadcast %1 : f32 to vector<8x128xf32>
    %6 = arith.addf %4, %5 : vector<8x128xf32>
    %cst = arith.constant 0.000000e+00 : f32
    %7 = vector.broadcast %cst : f32 to vector<8x128xf32>
    %8 = arith.maximumf %6, %7 : vector<8x128xf32>
    %c0_4 = arith.constant 0 : index
    %c0_5 = arith.constant 0 : index
    %9 = vector.load %arg4[%c0_4, %c0_5] : memref<8x128xf32, #tpu.memory_space<vmem>>, vector<8x128xf32>
    tpu.vector_store %arg4[%c0_4, %c0_5], %8 {strides = array<i32>} : memref<8x128xf32, #tpu.memory_space<vmem>>, vector<8x128xf32>,
    return
  }
  func.func @transform_0(%arg0: i32) -> (i32, i32) {
    %c0_i32 = arith.constant 0 : i32
    %c0_i32_0 = arith.constant 0 : i32
    %c0_i32_1 = arith.constant 0 : i32
    return %c0_i32, %c0_i32_0 : i32, i32
  }
  func.func @transform_1(%arg0: i32) -> i32 {
    %c0_i32 = arith.constant 0 : i32
    %c0_i32_0 = arith.constant 0 : i32
    return %c0_i32 : i32
  }
  func.func @transform_2(%arg0: i32) -> (i32, i32) {
    %c0_i32 = arith.constant 0 : i32
    %c0_i32_0 = arith.constant 0 : i32
    return %arg0, %c0_i32 : i32, i32
  }
  func.func @transform_3(%arg0: i32) -> (i32, i32) {
    %c0_i32 = arith.constant 0 : i32
    %c0_i32_0 = arith.constant 0 : i32
    return %arg0, %c0_i32 : i32, i32
  }
}

</mosaic_0001>

<bundles_post_ra>
// kernel: tpu_custom_call.1
= control target key start
LH: loop header
LB: loop body
LE: loop exit
PB: predicated region body
PF: predicated region fallthrough
CT: control target
= control target key end

     0   :  { %10 = vsyncpa [#allocation5], 0  ;;  %s155_s0 = inlined_call_operand.<no memory space> [shape: f32[1,1], index: 0, kind: input, shape index: {}]   ;;  %s156_s1 = inlined_call_operand.<no memory space> [shape: f32[1], index: 1, kind: input, shape index: {}]   ;;  %s157_s2 = inlined_call_operand.hbm [shape: f32[8,128], index: 2, kind: input, shape index: {}]   ;;  %s158_s3 = inlined_call_operand.hbm [shape: f32[8,128], index: 3, kind: output, shape index: {}]  }
   0x1   :  { %11 = vsyncpa [#allocation6], 0  ;;  %s103_s12 = smov [#allocation4]   ;;  %s55_s16 = scalar_lea.hbm %s157_s2, 128 }
   0x2   :  { %s22_s13 = sshll.u32 %s103_s12, 4  ;;  %p56_p0 = scmp.ne.s32.totalorder %s157_s2, %s55_s16  ;;  %s23_s13 = int_to_ptr.vmem [resolvable:$true] %s22_s13 }
   0x3   :  { %p59_p1 = scmp.lt.u32.totalorder %s55_s16, %s157_s2 }
   0x5   :  { %p61_p2 = pnand %p59_p1, %p56_p0 }
   0x7   :  { %64 = shalt.err (!%p61_p2)
}
   0x8   :  { %s65_s21 = scalar_lea.vmem %s23_s13, 128  ;;  %p70_p4 = scmp.lt.s32.totalorder %s23_s13, %s23_s13 }
   0x9   :  { %p66_p3 = scmp.ne.s32.totalorder %s23_s13, %s65_s21  ;;  %p71_p5 = scmp.lt.s32.totalorder %s65_s21, %s65_s21 }
   0xb   :  { %p72_p6 = por %p71_p5, %p70_p4 }
   0xd   :  { %p73_p7 = pnand %p72_p6, %p66_p3 }
   0xf   :  { %76 = shalt.err (!%p73_p7)
}
  0x10   :  { %25 = dma.hbm_to_vmem [thread:$0]  %s157_s2, 128, %s23_s13, [#allocation5]  }
  0x11   :  { %99 = dma.done.wait [#allocation5], 128  }
  0x12   :  { %100 = vsyncadd [#allocation5], 4294967168  ;;  %v32_v0 = vstv %s155_s0  ;;  %v31_v1 = vld [vmem:[#allocation4] sm:$0xff]  ;;  %v34_v2 = vstv %s156_s1  ;;  %s104_s28 = smov [#allocation7]  }
  0x13   :  { %v33_v3 = vmul.f32 %v32_v0, %v31_v1  ;;  %s44_s29 = sshll.u32 %s104_s28, 4  ;;  %s45_s29 = int_to_ptr.vmem [resolvable:$true] %s44_s29 }
  0x14   :  { %s77_s30 = scalar_lea.vmem %s45_s29, 128  ;;  %p82_p9 = scmp.lt.s32.totalorder %s45_s29, %s45_s29 }
  0x15   :  { %v35_v4 = vadd.f32 %v34_v2, %v33_v3  ;;  %p78_p8 = scmp.ne.s32.totalorder %s45_s29, %s77_s30  ;;  %p83_p10 = scmp.lt.s32.totalorder %s77_s30, %s77_s30 }
  0x17   :  { %v36_v5 = vmax.f32 %v35_v4, 0.0  ;;  %p84_p11 = por %p83_p10, %p82_p9 }
  0x19   :  { %37 = vst [vmem:[#allocation7] sm:$0xff] %v36_v5  ;;  %p85_p12 = pnand %p84_p11, %p78_p8 }
  0x1b   :  { %88 = shalt.err (!%p85_p12)
}
  0x1c   :  { %s89_s4 = scalar_lea.hbm %s158_s3, 128 }
  0x1d   :  { %p90_p13 = scmp.ne.s32.totalorder %s158_s3, %s89_s4  ;;  %p93_p0 = scmp.lt.u32.totalorder %s89_s4, %s158_s3 }
  0x1f   :  { %p95_p1 = pnand %p93_p0, %p90_p13 }
  0x21   :  { %98 = shalt.err (!%p95_p1)
}
  0x22   :  { %47 = dma.vmem_to_hbm [thread:$0]  %s45_s29, 128, %s158_s3, [#allocation6]  }
  0x23   :  { %101 = dma.done.wait [#allocation6], 128  }
  0x24   :  { %102 = vsyncadd [#allocation6], 4294967168 }
  0x25   :  { %51 = vsyncpa [#allocation5], 1 }
  0x26   :  { %52 = vsyncpa [#allocation6], 1 }

</bundles_post_ra>
